<compile_context>
chip_gen: v7x
topology: tpu7x:2x2x1
jax: 0.10.0
libtpu: 0.0.40
codegen_flags: <defaults>
</compile_context>

<pallas_src>
import jax
import jax.numpy as jnp
from jax.experimental import pallas as pl
from jax.experimental.pallas import tpu as pltpu


def _round_up(n, m):
    return (n + m - 1) // m * m


def _fc_kernel(x_ref, w_ref, b_ref, o_ref):
    # MXU matmul (full f32 precision) with f32 accumulation; bias add on the
    # VPU in f32; single cast at the final lane-dense store.
    acc = jnp.dot(
        x_ref[...], w_ref[...],
        preferred_element_type=jnp.float32,
        precision=jax.lax.Precision.HIGHEST,
    )
    o_ref[...] = (acc + b_ref[...]).astype(o_ref.dtype)


def prepack_fc_params(weight, bias, fold=4):
    """One-time packing of nn.Linear params for the folded kernel.

    weight: [out, in] (PyTorch layout), bias: [out]
    Returns:
      w_packed: [fold*in, fold*out] block-diagonal (fold copies of W.T)
      b_packed: [1, fold*out] tiled bias
    """
    out_dim, in_dim = weight.shape
    wt = weight.astype(jnp.float32).T                                  # [in, out]
    w_packed = jnp.kron(jnp.eye(fold, dtype=jnp.float32), wt)          # [fold*in, fold*out]
    b_packed = jnp.tile(bias.astype(jnp.float32).reshape(1, out_dim), (1, fold))
    return w_packed, b_packed


def fc_forward(x, w_packed, b_packed, *, fold=4, tile_m=1024, out_dtype=None):
    """x: [B, in] -> [B, out], with params pre-packed by prepack_fc_params."""
    B, in_dim = x.shape
    in_f, out_f = w_packed.shape
    assert in_f == fold * in_dim, "w_packed does not match fold/in_dim"
    out_dim = out_f // fold
    out_dtype = x.dtype if out_dtype is None else out_dtype

    # Fold `fold` rows of x into one lane-dense row.  If B is not a multiple
    # of fold, pad by at most fold-1 zero rows (edge case; never pad to tm).
    rem = B % fold
    if rem:
        x = jnp.concatenate([x, jnp.zeros((fold - rem, in_dim), x.dtype)], axis=0)
    bp = x.shape[0]
    bf = bp // fold
    x_f = x.reshape(bf, in_f)  # free, contiguous view

    # Tile over folded rows: aim for >=4 grid steps at large B (v7x dual-TC
    # sharding of the "parallel" axis) while keeping tiles large enough to
    # amortize ~0.35us/step on v6e/v5e.  Footprint stays far under v7x's
    # 32 MiB scoped-VMEM default (tm=1024 -> ~0.5 MiB in + 1 MiB out tile,
    # double-buffered).
    tm = max(8, min(tile_m, _round_up(pl.cdiv(bf, 4), 8)))
    if tm >= bf:
        tm, grid = bf, (1,)  # single block == full array (no sublane constraint)
    else:
        grid = (pl.cdiv(bf, tm),)

    out_folded = pl.pallas_call(
        _fc_kernel,
        out_shape=jax.ShapeDtypeStruct((bf, out_f), out_dtype),
        grid=grid,
        in_specs=[
            # x: tiled over folded batch rows -> pipelined DMA per grid step.
            pl.BlockSpec((tm, in_f), lambda i: (i, 0)),
            # weight / bias: constant index_map -> VMEM-resident across steps
            # (Mosaic elides the refetch for unchanged block indices).
            pl.BlockSpec((in_f, out_f), lambda i: (0, 0)),
            pl.BlockSpec((1, out_f), lambda i: (0, 0)),
        ],
        out_specs=pl.BlockSpec((tm, out_f), lambda i: (i, 0)),
        compiler_params=pltpu.CompilerParams(
            # Folded-batch axis is fully independent: shard across TCs on v7x.
            dimension_semantics=("parallel",),
        ),
    )(x_f, w_packed, b_packed)

    out = out_folded.reshape(bp, out_dim)  # free view back to [B(+pad), out]
    if rem:
        out = out[:B]
    return out


def init_fc_params(key, input_size=32, output_size=64, kaiming=True):
    """Deterministic parameter init mirroring the PyTorch module's __init__."""
    k_w, k_b = jax.random.split(key)
    if kaiming:
        # kaiming_normal_: std = gain / sqrt(fan_in), gain = sqrt(2)
        std = jnp.sqrt(2.0 / input_size)
        weight = std * jax.random.normal(k_w, (output_size, input_size), jnp.float32)
    else:
        bound_w = 1.0 / jnp.sqrt(input_size)
        weight = jax.random.uniform(k_w, (output_size, input_size), jnp.float32,
                                    -bound_w, bound_w)
    # nn.Linear default bias init: U(-1/sqrt(fan_in), 1/sqrt(fan_in))
    bound = 1.0 / jnp.sqrt(input_size)
    bias = jax.random.uniform(k_b, (output_size,), jnp.float32, -bound, bound)
    return weight, bias


if __name__ == "__main__":
    key = jax.random.PRNGKey(0)
    k_x, k_p = jax.random.split(key)

    input_size, output_size, batch = 32, 64, 8
    x = jax.random.normal(k_x, (batch, input_size), jnp.float32)
    weight, bias = init_fc_params(k_p, input_size, output_size, kaiming=True)

    # One-time parameter packing (hoisted out of the per-call path).
    w_packed, b_packed = prepack_fc_params(weight, bias, fold=4)

    out = fc_forward(x, w_packed, b_packed, fold=4)
    jax.block_until_ready(out)

    assert out.shape == (batch, output_size)

    # f32 reference (f32 data + HIGHEST-precision MXU -> should match tightly;
    # tolerance kept generous in case of precision-mode differences).
    ref = x @ weight.T + bias
    assert jnp.allclose(out, ref, atol=2e-2, rtol=2e-2), float(
        jnp.max(jnp.abs(out - ref)))

    print("KERNEL_OK")
</pallas_src>

<mosaic_0001>
module attributes {stable_mosaic.version = 11 : i64} {
  func.func @_fc_kernel(%arg0: i32, %arg1: memref<2x128xf32, #tpu.memory_space<vmem>>, %arg2: memref<128x256xf32, #tpu.memory_space<vmem>>, %arg3: memref<1x256xf32, #tpu.memory_space<vmem>>, %arg4: memref<2x256xf32, #tpu.memory_space<vmem>>) attributes {dimension_semantics = [#tpu.dimension_semantics<parallel>], iteration_bounds = array<i64: 1>, scalar_prefetch = 0 : i64, scratch_operands = 0 : i64, tpu.core_type = #tpu.core_type<tc>, window_params = [{transform_indices = @transform_0, window_bounds = array<i64: 2, 128>}, {pipeline_mode = #tpu.pipeline_mode<synchronous>, transform_indices = @transform_1, window_bounds = array<i64: 128, 256>}, {pipeline_mode = #tpu.pipeline_mode<synchronous>, transform_indices = @transform_2, window_bounds = array<i64: 1, 256>}, {transform_indices = @transform_3, window_bounds = array<i64: 2, 256>}]} {
    %c0 = arith.constant 0 : index
    %c0_0 = arith.constant 0 : index
    %0 = vector.load %arg1[%c0, %c0_0] : memref<2x128xf32, #tpu.memory_space<vmem>>, vector<2x128xf32>
    %c0_1 = arith.constant 0 : index
    %c0_2 = arith.constant 0 : index
    %1 = vector.load %arg2[%c0_1, %c0_2] : memref<128x256xf32, #tpu.memory_space<vmem>>, vector<128x256xf32>
    %cst = arith.constant dense<0.000000e+00> : vector<2x256xf32>
    %2 = tpu.matmul %0, %1, %cst {dimension_numbers = #tpu.dot_dimension_numbers<[1], [0], [0], [1], [0, 0, 1, 1], [], []>, precision = #tpu.contract_precision<fp32>} : vector<2x128xf32>, vector<128x256xf32>, vector<2x256xf32> -> vector<2x256xf32>
    %c0_3 = arith.constant 0 : index
    %c0_4 = arith.constant 0 : index
    %3 = vector.load %arg3[%c0_3, %c0_4] : memref<1x256xf32, #tpu.memory_space<vmem>>, vector<1x256xf32>
    %4 = vector.broadcast %3 : vector<1x256xf32> to vector<2x256xf32>
    %5 = arith.addf %2, %4 : vector<2x256xf32>
    %c0_5 = arith.constant 0 : index
    %c0_6 = arith.constant 0 : index
    %6 = vector.load %arg4[%c0_5, %c0_6] : memref<2x256xf32, #tpu.memory_space<vmem>>, vector<2x256xf32>
    tpu.vector_store %arg4[%c0_5, %c0_6], %5 {strides = array<i32>} : memref<2x256xf32, #tpu.memory_space<vmem>>, vector<2x256xf32>,
    return
  }
  func.func @transform_0(%arg0: i32) -> (i32, i32) {
    %c0_i32 = arith.constant 0 : i32
    %c0_i32_0 = arith.constant 0 : i32
    return %arg0, %c0_i32 : i32, i32
  }
  func.func @transform_1(%arg0: i32) -> (i32, i32) {
    %c0_i32 = arith.constant 0 : i32
    %c0_i32_0 = arith.constant 0 : i32
    %c0_i32_1 = arith.constant 0 : i32
    return %c0_i32, %c0_i32_0 : i32, i32
  }
  func.func @transform_2(%arg0: i32) -> (i32, i32) {
    %c0_i32 = arith.constant 0 : i32
    %c0_i32_0 = arith.constant 0 : i32
    %c0_i32_1 = arith.constant 0 : i32
    return %c0_i32, %c0_i32_0 : i32, i32
  }
  func.func @transform_3(%arg0: i32) -> (i32, i32) {
    %c0_i32 = arith.constant 0 : i32
    %c0_i32_0 = arith.constant 0 : i32
    return %arg0, %c0_i32 : i32, i32
  }
}

</mosaic_0001>

<bundles_post_ra>
// kernel: tpu_custom_call.1
= control target key start
LH: loop header
LB: loop body
LE: loop exit
PB: predicated region body
PF: predicated region fallthrough
CT: control target
= control target key end

     0   :  { %8 = vsyncpa [#allocation3], 0  ;;  %s1581_s0 = inlined_call_operand.hbm [shape: f32[2,128], index: 0, kind: input, shape index: {}]   ;;  %s1582_s1 = inlined_call_operand.hbm [shape: f32[128,256], index: 1, kind: input, shape index: {}]   ;;  %s1583_s2 = inlined_call_operand.vmem [shape: f32[1,256], index: 2, kind: input, shape index: {}]   ;;  %s1584_s3 = inlined_call_operand.hbm [shape: f32[2,256], index: 3, kind: output, shape index: {}]  }
   0x1   :  { %9 = vsyncpa [#allocation6], 0 }
   0x2   :  { %10 = vsyncpa [#allocation4], 0  ;;  %s1252_s12 = smov [#allocation2]   ;;  %s1253_s14 = smov [#allocation5]  }
   0x3   :  { %s17_s13 = sshll.u32 %s1252_s12, 4  ;;  %s26_s15 = sshll.u32 %s1253_s14, 4  ;;  %s18_s13 = int_to_ptr.vmem [resolvable:$true] %s17_s13  ;;  %s1278_s15 = int_to_ptr.vmem [resolvable:$true] %s26_s15 }
   0x4   :  { %s1180_s18 = scalar_lea.hbm %s1581_s0, 32 }
   0x5   :  { %p1181_p0 = scmp.ne.s32.totalorder %s1581_s0, %s1180_s18  ;;  %p1184_p1 = scmp.lt.u32.totalorder %s1180_s18, %s1581_s0 }
   0x7   :  { %p1186_p2 = pnand %p1184_p1, %p1181_p0 }
   0x9   :  { %1189 = shalt.err (!%p1186_p2)
}
   0xa   :  { %s1190_s23 = scalar_lea.vmem %s18_s13, 32  ;;  %p1195_p4 = scmp.lt.s32.totalorder %s18_s13, %s18_s13 }
   0xb   :  { %p1191_p3 = scmp.ne.s32.totalorder %s18_s13, %s1190_s23  ;;  %p1196_p5 = scmp.lt.s32.totalorder %s1190_s23, %s1190_s23 }
   0xd   :  { %p1197_p6 = por %p1196_p5, %p1195_p4 }
   0xf   :  { %p1198_p7 = pnand %p1197_p6, %p1191_p3 }
  0x11   :  { %1201 = shalt.err (!%p1198_p7)
}
  0x12   :  { %20 = dma.hbm_to_vmem [thread:$0]  %s1581_s0, 32, %s18_s13, [#allocation3]  }
  0x13   :  { %s1202_s28 = scalar_lea.hbm %s1582_s1, 4096 }
  0x14   :  { %p1203_p8 = scmp.ne.s32.totalorder %s1582_s1, %s1202_s28  ;;  %p1206_p9 = scmp.lt.u32.totalorder %s1202_s28, %s1582_s1 }
  0x16   :  { %p1208_p10 = pnand %p1206_p9, %p1203_p8 }
  0x18   :  { %1211 = shalt.err (!%p1208_p10)
}
  0x19   :  { %s1212_s6 = scalar_lea.vmem %s1278_s15, 4096  ;;  %p1217_p12 = scmp.lt.s32.totalorder %s1278_s15, %s1278_s15 }
  0x1a   :  { %p1213_p11 = scmp.ne.s32.totalorder %s1278_s15, %s1212_s6  ;;  %p1218_p13 = scmp.lt.s32.totalorder %s1212_s6, %s1212_s6 }
  0x1c   :  { %p1219_p0 = por %p1218_p13, %p1217_p12 }
  0x1e   :  { %p1220_p1 = pnand %p1219_p0, %p1213_p11 }
  0x20   :  { %1223 = shalt.err (!%p1220_p1)
}
  0x21   :  { %s1254_s0 = smov 256   ;;  %s1255_s7 = smov 16  }
  0x22   :  { %32 = dma.hbm_to_vmem [thread:$0]  %s1582_s1, 4096, %s1278_s15, [#allocation6], %s1254_s0, %s1254_s0, %s1255_s7  }
  0x23   :  { %1246 = dma.done.wait [#allocation3], 32  }
  0x24   :  { %1247 = vsyncadd [#allocation3], 4294967264 }
  0x25   :  { %1248 = dma.done.wait [#allocation6], 4096  }
  0x26   :  { %1249 = vsyncadd [#allocation6], 4294963200  ;;  %v1585_v0 = vmov 0.0   ;;  %v43_v1 = vld [vmem:[#allocation5 + $0x8] sm:$0xff]  ;;  %v45_v2 = vld [vmem:[#allocation5 + $0x18] sm:$0xff]  ;;  %s1257_s11 = smov [#allocation7]  }
  0x27   :  { %182 = vmatprep.mubr.f32.mxu1 %v1585_v0  ;;  %659 = vmatprep.mubr.f32.mxu0 %v1585_v0  ;;  %v42_v3 = vld [vmem:[#allocation5] sm:$0xff]  ;;  %v86_v4 = vand.u32 4294901760, %v43_v1  ;;  %v90_v5 = vand.u32 4294901760, %v45_v2  ;;  %v44_v6 = vld [vmem:[#allocation5 + $0x10] sm:$0xff]  ;;  %v47_v8 = vld [vmem:[#allocation5 + $0x28] sm:$0xff]  ;;  %s959_s12 = sshll.u32 %s1257_s11, 4  ;;  %s960_s12 = int_to_ptr.vmem [resolvable:$true] %s959_s12 }
  0x28   :  { %v88_v7 = vand.u32 4294901760, %v42_v3  ;;  %v49_v9 = vld [vmem:[#allocation5 + $0x38] sm:$0xff]  ;;  %v92_v10 = vand.u32 4294901760, %v44_v6  ;;  %v94_v11 = vand.u32 4294901760, %v47_v8  ;;  %v46_v13 = vld [vmem:[#allocation5 + $0x20] sm:$0xff]  ;;  %v48_v14 = vld [vmem:[#allocation5 + $0x30] sm:$0xff]  ;;  %p1229_p3 = scmp.lt.s32.totalorder %s960_s12, %s960_s12 }
  0x29   :  { %v98_v12 = vand.u32 4294901760, %v49_v9  ;;  %v51_v15 = vld [vmem:[#allocation5 + $0x48] sm:$0xff]  ;;  %v1311_v16 = vpack.c.bf16 %v90_v5, %v86_v4  ;;  %v53_v17 = vld [vmem:[#allocation5 + $0x58] sm:$0xff]  ;;  %v50_v18 = vld [vmem:[#allocation5 + $0x40] sm:$0xff]  ;;  %v1313_v20 = vsub.f32 %v43_v1, %v86_v4  ;;  %v1320_v25 = vsub.f32 %v45_v2, %v90_v5  ;;  %s1224_s13 = scalar_lea.vmem %s960_s12, 64 }
  0x2a   :  { %v52_v19 = vld [vmem:[#allocation5 + $0x50] sm:$0xff]  ;;  %v1315_v21 = vpack.c.bf16 %v92_v10, %v88_v7  ;;  %v55_v23 = vld [vmem:[#allocation5 + $0x68] sm:$0xff]  ;;  %v57_v24 = vld [vmem:[#allocation5 + $0x78] sm:$0xff]  ;;  %v96_v26 = vand.u32 4294901760, %v46_v13  ;;  %v100_v27 = vand.u32 4294901760, %v48_v14  ;;  %v102_v28 = vand.u32 4294901760, %v51_v15  ;;  %p1225_p2 = scmp.ne.s32.totalorder %s960_s12, %s1224_s13  ;;  %p1230_p4 = scmp.lt.s32.totalorder %s1224_s13, %s1224_s13 }
  0x2b   :  { %v1317_v22 = vpack.c.bf16 %v98_v12, %v94_v11  ;;  %971 = vmatprep.subr.bf16.mxu1 %v1311_v16  ;;  %1067 = vmatprep.subr.bf16.mxu0 %v1311_v16  ;;  %v1324_v29 = vsub.f32 %v42_v3, %v88_v7  ;;  %v106_v30 = vand.u32 4294901760, %v53_v17  ;;  %v104_v31 = vand.u32 4294901760, %v50_v18  ;;  %v54_v37 = vld [vmem:[#allocation5 + $0x60] sm:$0xff]  ;;  %v56_v38 = vld [vmem:[#allocation5 + $0x70] sm:$0xff]  ;;  %v59_v39 = vld [vmem:[#allocation5 + $0x88] sm:$0xff] }
  0x2c   :  { %1609 = vst [vmem:[#allocation11_spill] sm:$0xff] %v1315_v21  ;;  %973 = vmatpush1.bf16.msra.mxu1 %v1315_v21  ;;  %1069 = vmatpush1.bf16.msra.mxu0 %v1315_v21  ;;  %v108_v32 = vand.u32 4294901760, %v52_v19  ;;  %v1327_v33 = vsub.f32 %v44_v6, %v92_v10  ;;  %v1331_v34 = vpack.c.bf16 %v100_v27, %v96_v26  ;;  %v110_v35 = vand.u32 4294901760, %v55_v23  ;;  %v61_v44 = vld [vmem:[#allocation5 + $0x98] sm:$0xff]  ;;  %v58_v45 = vld [vmem:[#allocation5 + $0x80] sm:$0xff]  ;;  %v60_v46 = vld [vmem:[#allocation5 + $0x90] sm:$0xff]  ;;  %p1231_p5 = por %p1230_p4, %p1229_p3 }
  0x2d   :  { %1610 = vst [vmem:[#allocation12_spill] sm:$0xff] %v1317_v22  ;;  %975 = vmatprep.subr.bf16.mxu1 %v1317_v22  ;;  %1071 = vmatprep.subr.bf16.mxu0 %v1317_v22  ;;  %v114_v36 = vand.u32 4294901760, %v57_v24  ;;  %v1333_v40 = vsub.f32 %v47_v8, %v94_v11  ;;  %v1335_v41 = vsub.f32 %v49_v9, %v98_v12  ;;  %v63_v51 = vld [vmem:[#allocation5 + $0xa8] sm:$0xff]  ;;  %v112_v53 = vand.u32 4294901760, %v54_v37  ;;  %v65_v60 = vld [vmem:[#allocation5 + $0xb8] sm:$0xff]  ;;  %v62_v61 = vld [vmem:[#allocation5 + $0xa0] sm:$0xff] }
  0x2e   :  { %1611 = vst [vmem:[#allocation13_spill] sm:$0xff] %v1331_v34  ;;  %v1337_v42 = vsub.f32 %v46_v13, %v96_v26  ;;  %v1339_v43 = vpack.c.bf16 %v106_v30, %v102_v28  ;;  %v1341_v47 = vsub.f32 %v48_v14, %v100_v27  ;;  %v1343_v48 = vsub.f32 %v51_v15, %v102_v28  ;;  %v64_v3 = vld [vmem:[#allocation5 + $0xb0] sm:$0xff]  ;;  %v67_v4 = vld [vmem:[#allocation5 + $0xc8] sm:$0xff]  ;;  %v69_v5 = vld [vmem:[#allocation5 + $0xd8] sm:$0xff]  ;;  %p1232_p6 = pnand %p1231_p5, %p1225_p2 }
  0x2f   :  { %v1345_v49 = vsub.f32 %v53_v17, %v106_v30  ;;  %v1347_v50 = vpack.c.bf16 %v108_v32, %v104_v31  ;;  %v1351_v52 = vsub.f32 %v50_v18, %v104_v31  ;;  %v116_v54 = vand.u32 4294901760, %v56_v38  ;;  %v66_v10 = vld [vmem:[#allocation5 + $0xc0] sm:$0xff]  ;;  %v68_v15 = vld [vmem:[#allocation5 + $0xd0] sm:$0xff]  ;;  %v71_v30 = vld [vmem:[#allocation5 + $0xe8] sm:$0xff] }
  0x30   :  { %1612 = vst [vmem:[#allocation14_spill] sm:$0xff] %v1337_v42  ;;  %1613 = vst [vmem:[#allocation15_spill] sm:$0xff] %v1339_v43  ;;  %977 = vmatpush1.bf16.msra.mxu1 %v1331_v34  ;;  %1073 = vmatpush1.bf16.msra.mxu0 %v1331_v34  ;;  %v118_v55 = vand.u32 4294901760, %v59_v39  ;;  %v1355_v56 = vpack.c.bf16 %v114_v36, %v110_v35  ;;  %v122_v57 = vand.u32 4294901760, %v61_v44  ;;  %v120_v58 = vand.u32 4294901760, %v58_v45  ;;  %v73_v31 = vld [vmem:[#allocation5 + $0xf8] sm:$0xff] }
  0x31   :  { %1614 = vst [vmem:[#allocation16_spill] sm:$0xff] %v1341_v47  ;;  %1615 = vst [vmem:[#allocation17_spill] sm:$0xff] %v1347_v50  ;;  %979 = vmatprep.subr.bf16.mxu1 %v1339_v43  ;;  %1075 = vmatprep.subr.bf16.mxu0 %v1339_v43  ;;  %v124_v59 = vand.u32 4294901760, %v60_v46  ;;  %v1357_v62 = vsub.f32 %v52_v19, %v108_v32  ;;  %v1359_v63 = vsub.f32 %v55_v23, %v110_v35  ;;  %v70_v32 = vld [vmem:[#allocation5 + $0xe0] sm:$0xff] }
  0x32   :  { %1616 = vst [vmem:[#allocation18_spill] sm:$0xff] %v1351_v52  ;;  %1617 = vst [vmem:[#allocation19_spill] sm:$0xff] %v1355_v56  ;;  %v1361_v1 = vsub.f32 %v57_v24, %v114_v36  ;;  %v126_v2 = vand.u32 4294901760, %v63_v51  ;;  %v1363_v6 = vpack.c.bf16 %v116_v54, %v112_v53  ;;  %v1365_v7 = vsub.f32 %v54_v37, %v112_v53 }
  0x33   :  { %1618 = vst [vmem:[#allocation20_spill] sm:$0xff] %v1357_v62  ;;  %v1367_v8 = vsub.f32 %v56_v38, %v116_v54  ;;  %v1369_v9 = vsub.f32 %v59_v39, %v118_v55  ;;  %v1373_v11 = vpack.c.bf16 %v122_v57, %v118_v55  ;;  %v1375_v12 = vsub.f32 %v61_v44, %v122_v57  ;;  %v72_v39 = vld [vmem:[#allocation5 + $0xf0] sm:$0xff]  ;;  %v41_v44 = vld [vmem:[#allocation2] sm:$0x3] }
  0x34   :  { %1619 = vst [vmem:[#allocation21_spill] sm:$0xff] %v1363_v6  ;;  %981 = vmatpush1.bf16.msra.mxu1 %v1347_v50  ;;  %1077 = vmatpush1.bf16.msra.mxu0 %v1347_v50  ;;  %v130_v13 = vand.u32 4294901760, %v65_v60  ;;  %v128_v14 = vand.u32 4294901760, %v62_v61  ;;  %v1379_v17 = vpack.c.bf16 %v124_v59, %v120_v58  ;;  %v132_v18 = vand.u32 4294901760, %v64_v3 }
  0x35   :  { %1620 = vst [vmem:[#allocation22_spill] sm:$0xff] %v1373_v11  ;;  %983 = vmatprep.subr.bf16.mxu1 %v1355_v56  ;;  %1079 = vmatprep.subr.bf16.mxu0 %v1355_v56  ;;  %v134_v19 = vand.u32 4294901760, %v67_v4  ;;  %v138_v23 = vand.u32 4294901760, %v69_v5  ;;  %v1381_v24 = vsub.f32 %v58_v45, %v120_v58  ;;  %v1383_v26 = vsub.f32 %v60_v46, %v124_v59 }
  0x36   :  { %1621 = vst [vmem:[#allocation23_spill] sm:$0xff] %v1379_v17  ;;  %v1385_v27 = vsub.f32 %v63_v51, %v126_v2  ;;  %v136_v28 = vand.u32 4294901760, %v66_v10  ;;  %v1387_v35 = vpack.c.bf16 %v130_v13, %v126_v2  ;;  %v1389_v36 = vsub.f32 %v65_v60, %v130_v13 }
  0x37   :  { %v1391_v37 = vsub.f32 %v62_v61, %v128_v14  ;;  %v140_v38 = vand.u32 4294901760, %v68_v15  ;;  %v1395_v45 = vpack.c.bf16 %v132_v18, %v128_v14  ;;  %v1397_v46 = vsub.f32 %v64_v3, %v132_v18 }
  0x38   :  { %1622 = vst [vmem:[#allocation24_spill] sm:$0xff] %v1385_v27  ;;  %1623 = vst [vmem:[#allocation25_spill] sm:$0xff] %v1387_v35  ;;  %985 = vmatpush1.bf16.msra.mxu1 %v1363_v6  ;;  %1081 = vmatpush1.bf16.msra.mxu0 %v1363_v6  ;;  %v1399_v51 = vpack.c.bf16 %v138_v23, %v134_v19  ;;  %v1403_v53 = vsub.f32 %v67_v4, %v134_v19  ;;  %v142_v54 = vand.u32 4294901760, %v71_v30 }
  0x39   :  { %1624 = vst [vmem:[#allocation26_spill] sm:$0xff] %v1395_v45  ;;  %987 = vmatprep.subr.bf16.mxu1 %v1373_v11  ;;  %1083 = vmatprep.subr.bf16.mxu0 %v1373_v11  ;;  %v146_v55 = vand.u32 4294901760, %v73_v31  ;;  %v144_v57 = vand.u32 4294901760, %v70_v32  ;;  %v148_v58 = vand.u32 4294901760, %v72_v39  ;;  %v196_v59 = vand.u32 4294901760, %v1313_v20 }
  0x3a   :  { %1625 = vst [vmem:[#allocation27_spill] sm:$0xff] %v1399_v51  ;;  %1626 = vst [vmem:[#allocation28_spill] sm:$0xff] %v1403_v53  ;;  %v208_v60 = vand.u32 4294901760, %v1320_v25  ;;  %v1407_v61 = vand.u32 4294901760, %v41_v44  ;;  %v1409_v2 = vsub.f32 %v69_v5, %v138_v23  ;;  %v1411_v3 = vpack.c.bf16 %v140_v38, %v136_v28 }
  0x3b   :  { %v1413_v13 = vsub.f32 %v66_v10, %v136_v28  ;;  %v1415_v14 = vsub.f32 %v68_v15, %v140_v38  ;;  %v1419_v4 = vsub.f32 %v71_v30, %v142_v54  ;;  %v197_v18 = vsub.f32 %v1313_v20, %v196_v59 }
  0x3c   :  { %1627 = vst [vmem:[#allocation29_spill] sm:$0xff] %v1411_v3  ;;  %989 = vmatpush1.bf16.msra.mxu1 %v1379_v17  ;;  %1085 = vmatpush1.bf16.msra.mxu0 %v1379_v17  ;;  %v209_v19 = vsub.f32 %v1320_v25, %v208_v60  ;;  %v202_v0 = vand.u32 4294901760, %v1324_v29  ;;  %v1426_v5 = vpack.c.bf16 %v146_v55, %v142_v54  ;;  %v214_v15 = vand.u32 4294901760, %v1327_v33 }
  0x3d   :  { %991 = vmatprep.subr.bf16.mxu1 %v1387_v35  ;;  %1087 = vmatprep.subr.bf16.mxu0 %v1387_v35  ;;  %v1429_v10 = vsub.f32 %v41_v44, %v1407_v61  ;;  %v220_v23 = vand.u32 4294901760, %v1333_v40  ;;  %v1433_v28 = vsub.f32 %v73_v31, %v146_v55  ;;  %v1435_v30 = vpack.c.bf16 %v148_v58, %v144_v57 }
  0x3e   :  { %1628 = vst [vmem:[#allocation30_spill] sm:$0xff] %v1426_v5  ;;  %v203_v38 = vsub.f32 %v1324_v29, %v202_v0  ;;  %v232_v17 = vand.u32 4294901760, %v1335_v41  ;;  %v1439_v11 = vsub.f32 %v70_v32, %v144_v57  ;;  %v215_v35 = vsub.f32 %v1327_v33, %v214_v15 }
  0x3f   :  { %1629 = vst [vmem:[#allocation31_spill] sm:$0xff] %v1429_v10  ;;  %1630 = vst [vmem:[#allocation32_spill] sm:$0xff] %v1435_v30  ;;  %v185_v54 = vand.u32 4294901760, %v1429_v10  ;;  %v221_v44 = vsub.f32 %v1333_v40, %v220_v23  ;;  %v1446_v31 = vsub.f32 %v72_v39, %v148_v58  ;;  %v198_v55 = vand.u32 4294901760, %v197_v18 }
  0x40   :  { %993 = vmatpush1.bf16.msra.mxu1 %v1395_v45  ;;  %1089 = vmatpush1.bf16.msra.mxu0 %v1395_v45  ;;  %v210_v6 = vand.u32 4294901760, %v209_v19  ;;  %v233_v56 = vsub.f32 %v1335_v41, %v232_v17  ;;  %v1098_v32 = vpack.c.bf16 %v208_v60, %v196_v59  ;;  %v204_v50 = vand.u32 4294901760, %v203_v38 }
  0x41   :  { %995 = vmatprep.subr.bf16.mxu1 %v1399_v51  ;;  %1091 = vmatprep.subr.bf16.mxu0 %v1399_v51  ;;  %v186_v57 = vsub.f32 %v1429_v10, %v185_v54  ;;  %v226_v43 = vand.u32 4294901760, %v1337_v42  ;;  %v216_v34 = vand.u32 4294901760, %v215_v35  ;;  %v238_v22 = vand.u32 4294901760, %v1341_v47 }
  0x42   :  { %v244_v39 = vand.u32 4294901760, %v1343_v48  ;;  %v256_v58 = vand.u32 4294901760, %v1345_v49  ;;  %v1100_v18 = vpack.c.bf16 %v214_v15, %v202_v0  ;;  %v222_v19 = vand.u32 4294901760, %v221_v44 }
  0x43   :  { %v234_v45 = vand.u32 4294901760, %v233_v56  ;;  %v250_v21 = vand.u32 4294901760, %v1351_v52  ;;  %v1002_v59 = vpack.c.bf16 %v210_v6, %v198_v55  ;;  %v227_v60 = vsub.f32 %v1337_v42, %v226_v43 }
  0x44   :  { %997 = vmatpush1.bf16.msra.mxu1 %v1411_v3  ;;  %1093 = vmatpush1.bf16.msra.mxu0 %v1411_v3  ;;  %v239_v35 = vsub.f32 %v1341_v47, %v238_v22  ;;  %v262_v38 = vand.u32 4294901760, %v1357_v62  ;;  %v1102_v0 = vpack.c.bf16 %v232_v17, %v220_v23  ;;  %v245_v56 = vsub.f32 %v1343_v48, %v244_v39 }
  0x45   :  { %999 = vmatprep.subr.bf16.mxu1 %v1426_v5  ;;  %1095 = vmatprep.subr.bf16.mxu0 %v1426_v5  ;;  %v257_v15 = vsub.f32 %v1345_v49, %v256_v58  ;;  %v187_v44 = vand.u32 4294901760, %v186_v57  ;;  %v1004_v10 = vpack.c.bf16 %v216_v34, %v204_v50  ;;  %v251_v3 = vsub.f32 %v1351_v52, %v250_v21 }
  0x46   :  { %v263_v6 = vsub.f32 %v1357_v62, %v262_v38  ;;  %v1006_v55 = vpack.c.bf16 %v234_v45, %v222_v19  ;;  %v1104_v51 = vpack.c.bf16 %v238_v22, %v226_v43  ;;  %v268_v47 = vand.u32 4294901760, %v1359_v63 }
  0x47   :  { %v280_v42 = vand.u32 4294901760, %v1361_v1  ;;  %v228_v17 = vand.u32 4294901760, %v227_v60  ;;  %v240_v23 = vand.u32 4294901760, %v239_v35  ;;  %v246_v5 = vand.u32 4294901760, %v245_v56 }
  0x48   :  { %1001 = vmatpush1.bf16.msra.mxu1 %v1435_v30  ;;  %1097 = vmatpush1.bf16.msra.mxu0 %v1435_v30  ;;  %v274_v57 = vand.u32 4294901760, %v1365_v7  ;;  %v258_v34 = vand.u32 4294901760, %v257_v15  ;;  %v269_v50 = vsub.f32 %v1359_v63, %v268_v47  ;;  %v286_v43 = vand.u32 4294901760, %v1367_v8 }
  0x49   :  { %1003 = vmatprep.subr.bf16.mxu1 %v1002_v59  ;;  %1099 = vmatprep.subr.bf16.mxu0 %v1098_v32  ;;  %v281_v22 = vsub.f32 %v1361_v1, %v280_v42  ;;  %v1106_v45 = vpack.c.bf16 %v256_v58, %v244_v39  ;;  %v252_v19 = vand.u32 4294901760, %v251_v3  ;;  %v264_v62 = vand.u32 4294901760, %v263_v6 }
  0x4a   :  { %v292_v52 = vand.u32 4294901760, %v1369_v9  ;;  %v1108_v60 = vpack.c.bf16 %v262_v38, %v250_v21  ;;  %v270_v35 = vand.u32 4294901760, %v269_v50  ;;  %v275_v59 = vsub.f32 %v1365_v7, %v274_v57 }
  0x4b   :  { %188 = vmatmul.mubr.f32.vlgmr.msra.gmra.mrb[0].mxu1 %v187_v44  ;;  %663 = vmatmul.mubr.f32.vlgmr.msra.gmra.mrb[0].mxu0 %v185_v54  ;;  %v282_v56 = vand.u32 4294901760, %v281_v22  ;;  %v1008_v32 = vpack.c.bf16 %v240_v23, %v228_v17  ;;  %v287_v15 = vsub.f32 %v1367_v8, %v286_v43  ;;  %v304_v30 = vand.u32 4294901760, %v1375_v12 }
  0x4c   :  { %1005 = vmatpush1.bf16.msra.mxu1 %v1004_v10  ;;  %1101 = vmatpush1.bf16.msra.mxu0 %v1100_v18  ;;  %v298_v39 = vand.u32 4294901760, %v1381_v24  ;;  %v1010_v3 = vpack.c.bf16 %v258_v34, %v246_v5  ;;  %v293_v58 = vsub.f32 %v1369_v9, %v292_v52  ;;  %v310_v21 = vand.u32 4294901760, %v1383_v26 }
  0x4d   :  { %1007 = vmatprep.subr.bf16.mxu1 %v1006_v55  ;;  %1103 = vmatprep.subr.bf16.mxu0 %v1102_v0  ;;  %v316_v54 = vand.u32 4294901760, %v1385_v27  ;;  %v1012_v38 = vpack.c.bf16 %v264_v62, %v252_v19  ;;  %v305_v10 = vsub.f32 %v1375_v12, %v304_v30  ;;  %v1631_v44 = vmov 0.0  }
  0x4e   :  { %v299_v18 = vsub.f32 %v1381_v24, %v298_v39  ;;  %418 = vmatprep.mubr.f32.mxu1 %v1631_v44  ;;  %829 = vmatprep.mubr.f32.mxu0 %v1631_v44  ;;  %v1014_v6 = vpack.c.bf16 %v282_v56, %v270_v35  ;;  %v1110_v17 = vpack.c.bf16 %v280_v42, %v268_v47  ;;  %v276_v55 = vand.u32 4294901760, %v275_v59 }
  0x4f   :  { %v311_v5 = vsub.f32 %v1383_v26, %v310_v21  ;;  %v288_v0 = vand.u32 4294901760, %v287_v15  ;;  %v317_v23 = vsub.f32 %v1385_v27, %v316_v54  ;;  %v328_v62 = vand.u32 4294901760, %v1389_v36 }
  0x50   :  { %1009 = vmatpush1.bf16.msra.mxu1 %v1008_v32  ;;  %1105 = vmatpush1.bf16.msra.mxu0 %v1104_v51  ;;  %v322_v34 = vand.u32 4294901760, %v1391_v37  ;;  %v294_v50 = vand.u32 4294901760, %v293_v58  ;;  %v306_v22 = vand.u32 4294901760, %v305_v10  ;;  %v334_v19 = vand.u32 4294901760, %v1397_v46 }
  0x51   :  { %1011 = vmatprep.subr.bf16.mxu1 %v1010_v3  ;;  %1107 = vmatprep.subr.bf16.mxu0 %v1106_v45  ;;  %v340_v42 = vand.u32 4294901760, %v1403_v53  ;;  %v1112_v47 = vpack.c.bf16 %v286_v43, %v274_v57  ;;  %v1114_v35 = vpack.c.bf16 %v304_v30, %v292_v52  ;;  %v300_v56 = vand.u32 4294901760, %v299_v18 }
  0x52   :  { %v329_v51 = vsub.f32 %v1389_v36, %v328_v62  ;;  %v312_v59 = vand.u32 4294901760, %v311_v5  ;;  %v323_v32 = vsub.f32 %v1391_v37, %v322_v34  ;;  %v335_v15 = vsub.f32 %v1397_v46, %v334_v19 }
  0x53   :  { %v341_v27 = vsub.f32 %v1403_v53, %v340_v42  ;;  %v1016_v45 = vpack.c.bf16 %v288_v0, %v276_v55  ;;  %v318_v3 = vand.u32 4294901760, %v317_v23  ;;  %v352_v58 = vand.u32 4294901760, %v1409_v2 }
  0x54   :  { %1013 = vmatpush1.bf16.msra.mxu1 %v1012_v38  ;;  %1109 = vmatpush1.bf16.msra.mxu0 %v1108_v60  ;;  %v346_v10 = vand.u32 4294901760, %v1413_v13  ;;  %v1018_v52 = vpack.c.bf16 %v306_v22, %v294_v50  ;;  %v330_v30 = vand.u32 4294901760, %v329_v51  ;;  %v358_v57 = vand.u32 4294901760, %v1415_v14 }
  0x55   :  { %1015 = vmatprep.subr.bf16.mxu1 %v1014_v6  ;;  %1111 = vmatprep.subr.bf16.mxu0 %v1110_v17  ;;  %v364_v43 = vand.u32 4294901760, %v1419_v4  ;;  %v1116_v18 = vpack.c.bf16 %v310_v21, %v298_v39  ;;  %v1118_v5 = vpack.c.bf16 %v328_v62, %v316_v54  ;;  %v353_v53 = vsub.f32 %v1409_v2, %v352_v58 }
  0x56   :  { %v1020_v38 = vpack.c.bf16 %v312_v59, %v300_v56  ;;  %v324_v60 = vand.u32 4294901760, %v323_v32  ;;  %v336_v55 = vand.u32 4294901760, %v335_v15  ;;  %v342_v0 = vand.u32 4294901760, %v341_v27 }
  0x57   :  { %v347_v23 = vsub.f32 %v1413_v13, %v346_v10  ;;  %v359_v6 = vsub.f32 %v1415_v14, %v358_v57  ;;  %v376_v17 = vand.u32 4294901760, %v1433_v28  ;;  %v370_v50 = vand.u32 4294901760, %v1439_v11 }
  0x58   :  { %1017 = vmatpush1.bf16.msra.mxu1 %v1016_v45  ;;  %1113 = vmatpush1.bf16.msra.mxu0 %v1112_v47  ;;  %v1022_v39 = vpack.c.bf16 %v330_v30, %v318_v3  ;;  %v354_v21 = vand.u32 4294901760, %v353_v53  ;;  %v365_v54 = vsub.f32 %v1419_v4, %v364_v43  ;;  %v382_v62 = vand.u32 4294901760, %v1446_v31 }
  0x59   :  { %1019 = vmatprep.subr.bf16.mxu1 %v1018_v52  ;;  %1115 = vmatprep.subr.bf16.mxu0 %v1114_v35  ;;  %v377_v27 = vsub.f32 %v1433_v28, %v376_v17  ;;  %v1024_v22 = vpack.c.bf16 %v336_v55, %v324_v60  ;;  %v1120_v47 = vpack.c.bf16 %v334_v19, %v322_v34  ;;  %v348_v56 = vand.u32 4294901760, %v347_v23  ;;  %v1639_v55 = vld [vmem:[#allocation15_spill] sm:$0xff]  ;;  %v1640_v23 = vld [vmem:[#allocation17_spill] sm:$0xff] }
  0x5a   :  { %v360_v51 = vand.u32 4294901760, %v359_v6  ;;  %v371_v59 = vsub.f32 %v1439_v11, %v370_v50  ;;  %v383_v32 = vsub.f32 %v1446_v31, %v382_v62  ;;  %v1026_v35 = vpack.c.bf16 %v354_v21, %v342_v0  ;;  %v1642_v6 = vld [vmem:[#allocation21_spill] sm:$0xff] }
  0x5b   :  { %v1122_v53 = vpack.c.bf16 %v352_v58, %v340_v42  ;;  %v366_v15 = vand.u32 4294901760, %v365_v54  ;;  %v378_v45 = vand.u32 4294901760, %v377_v27  ;;  %v1124_v52 = vpack.c.bf16 %v358_v57, %v346_v10  ;;  %v1632_v57 = vld [vmem:[#allocation11_spill] sm:$0xff]  ;;  %v1652_v54 = vld [vmem:[#allocation32_spill] sm:$0xff] }
  0x5c   :  { %1021 = vmatpush1.bf16.msra.mxu1 %v1020_v38  ;;  %1117 = vmatpush1.bf16.msra.mxu0 %v1116_v18  ;;  %v1028_v3 = vpack.c.bf16 %v360_v51, %v348_v56  ;;  %v372_v30 = vand.u32 4294901760, %v371_v59  ;;  %v384_v34 = vand.u32 4294901760, %v383_v32  ;;  %v1126_v18 = vpack.c.bf16 %v376_v17, %v364_v43  ;;  %v1633_v43 = vld [vmem:[#allocation14_spill] sm:$0xff] }
  0x5d   :  { %1023 = vmatprep.subr.bf16.mxu1 %v1022_v39  ;;  %1119 = vmatprep.subr.bf16.mxu0 %v1118_v5  ;;  %v1030_v19 = vpack.c.bf16 %v378_v45, %v366_v15  ;;  %v1128_v60 = vpack.c.bf16 %v382_v62, %v370_v50  ;;  %v1034_v42 = vpack.c.bf16 %v1320_v25, %v1313_v20  ;;  %v1634_v20 = vld [vmem:[#allocation16_spill] sm:$0xff]  ;;  %v1653_v62 = vld [vmem:[#allocation31_spill] sm:$0xff] }
  0x5e   :  { %v1032_v38 = vpack.c.bf16 %v384_v34, %v372_v30  ;;  %v1036_v58 = vpack.c.bf16 %v1327_v33, %v1324_v29  ;;  %v1038_v10 = vpack.c.bf16 %v1335_v41, %v1333_v40  ;;  %v1040_v25 = vpack.c.bf16 %v1634_v20, %v1633_v43  ;;  %v1635_v5 = vld [vmem:[#allocation12_spill] sm:$0xff]  ;;  %v1637_v33 = vld [vmem:[#allocation18_spill] sm:$0xff] }
  0x5f   :  { %v1042_v29 = vpack.c.bf16 %v1345_v49, %v1343_v48  ;;  %v1638_v40 = vld [vmem:[#allocation20_spill] sm:$0xff]  ;;  %v1046_v0 = vpack.c.bf16 %v1361_v1, %v1359_v63  ;;  %v1048_v48 = vpack.c.bf16 %v1367_v8, %v1365_v7  ;;  %v1641_v49 = vld [vmem:[#allocation19_spill] sm:$0xff]  ;;  %v1052_v17 = vpack.c.bf16 %v1383_v26, %v1381_v24  ;;  %v1643_v63 = vld [vmem:[#allocation22_spill] sm:$0xff] }
  0x60   :  { %1025 = vmatpush1.bf16.msra.mxu1 %v1024_v22  ;;  %1121 = vmatpush1.bf16.msra.mxu0 %v1120_v47  ;;  %v1044_v41 = vpack.c.bf16 %v1638_v40, %v1637_v33  ;;  %v1644_v1 = vld [vmem:[#allocation24_spill] sm:$0xff]  ;;  %v1645_v7 = vld [vmem:[#allocation23_spill] sm:$0xff]  ;;  %v1056_v8 = vpack.c.bf16 %v1397_v46, %v1391_v37  ;;  %v1648_v24 = vld [vmem:[#allocation26_spill] sm:$0xff]  ;;  %v1060_v26 = vpack.c.bf16 %v1415_v14, %v1413_v13  ;;  %v76_v13 = vlaneseq }
  0x61   :  { %1027 = vmatprep.subr.bf16.mxu1 %v1026_v35  ;;  %1123 = vmatprep.subr.bf16.mxu0 %v1122_v53  ;;  %v1054_v50 = vpack.c.bf16 %v1389_v36, %v1644_v1  ;;  %v1649_v36 = vld [vmem:[#allocation27_spill] sm:$0xff]  ;;  %v1062_v21 = vpack.c.bf16 %v1433_v28, %v1419_v4  ;;  %v1650_v37 = vld [vmem:[#allocation29_spill] sm:$0xff]  ;;  %v1064_v46 = vpack.c.bf16 %v1446_v31, %v1439_v11  ;;  %v74_v4 = vld [vmem:[%s1583_s2] sm:$0x3] }
  0x62   :  { %v77_v14 = vshrl.u32 %v76_v13, 7 }
  0x64   :  { %1029 = vmatpush1.bf16.msra.mxu1 %v1028_v3  ;;  %1125 = vmatpush1.bf16.msra.mxu0 %v1124_v52  ;;  %v78_v27 = vsub.s32 0, %v77_v14  ;;  %v82_v28 = vsub.s32 1, %v77_v14 }
  0x65   :  { %1031 = vmatprep.subr.bf16.mxu1 %v1030_v19  ;;  %1127 = vmatprep.subr.bf16.mxu0 %v1126_v18 }
  0x66   :  { %v79_v22 = vrot.slane %v74_v4, %v78_v27  ;;  %v83_v11 = vrot.slane %v74_v4, %v82_v28 }
  0x68   :  { %1033 = vmatpush1.bf16.msra.mxu1 %v1032_v38  ;;  %1129 = vmatpush1.bf16.msra.mxu0 %v1128_v60 }
  0x69   :  { %1035 = vmatprep.subr.bf16.mxu1 %v1034_v42  ;;  %1131 = vmatprep.subr.bf16.mxu0 %v1311_v16  ;;  %v1636_v16 = vld [vmem:[#allocation13_spill] sm:$0xff] }
  0x6b   :  { %420 = vmatmul.mubr.f32.vlgmr.msra.gmra.mrb[0].mxu1 %v1407_v61  ;;  %831 = vmatmul.mubr.f32.vlgmr.msra.gmra.mrb[0].mxu0 %v1407_v61 }
  0x6c   :  { %1037 = vmatpush1.bf16.msra.mxu1 %v1036_v58  ;;  %1133 = vmatpush1.bf16.msra.mxu0 %v1632_v57 }
  0x6d   :  { %1039 = vmatprep.subr.bf16.mxu1 %v1038_v10  ;;  %1135 = vmatprep.subr.bf16.mxu0 %v1635_v5 }
  0x6e   :  { %554 = vmatprep.mubr.f32.mxu1 %v1631_v44  ;;  %933 = vmatprep.mubr.f32.mxu0 %v1631_v44  ;;  %v1050_v44 = vpack.c.bf16 %v1375_v12, %v1369_v9  ;;  %v1646_v9 = vld [vmem:[#allocation25_spill] sm:$0xff]  ;;  %v1647_v12 = vld [vmem:[#allocation28_spill] sm:$0xff] }
  0x6f   :  { %v1058_v39 = vpack.c.bf16 %v1409_v2, %v1647_v12  ;;  %v1651_v2 = vld [vmem:[#allocation30_spill] sm:$0xff] }
  0x70   :  { %1041 = vmatpush1.bf16.msra.mxu1 %v1040_v25  ;;  %1137 = vmatpush1.bf16.msra.mxu0 %v1636_v16 }
  0x71   :  { %1043 = vmatprep.subr.bf16.mxu1 %v1042_v29  ;;  %1139 = vmatprep.subr.bf16.mxu0 %v1639_v55 }
  0x74   :  { %1045 = vmatpush1.bf16.msra.mxu1 %v1044_v41  ;;  %1141 = vmatpush1.bf16.msra.mxu0 %v1640_v23 }
  0x75   :  { %1047 = vmatprep.subr.bf16.mxu1 %v1046_v0  ;;  %1143 = vmatprep.subr.bf16.mxu0 %v1641_v49 }
  0x78   :  { %1049 = vmatpush1.bf16.msra.mxu1 %v1048_v48  ;;  %1145 = vmatpush1.bf16.msra.mxu0 %v1642_v6 }
  0x79   :  { %1051 = vmatprep.subr.bf16.mxu1 %v1050_v44  ;;  %1147 = vmatprep.subr.bf16.mxu0 %v1643_v63 }
  0x7c   :  { %1053 = vmatpush1.bf16.msra.mxu1 %v1052_v17  ;;  %1149 = vmatpush1.bf16.msra.mxu0 %v1645_v7 }
  0x7d   :  { %1055 = vmatprep.subr.bf16.mxu1 %v1054_v50  ;;  %1151 = vmatprep.subr.bf16.mxu0 %v1646_v9 }
  0x80   :  { %1057 = vmatpush1.bf16.msra.mxu1 %v1056_v8  ;;  %1153 = vmatpush1.bf16.msra.mxu0 %v1648_v24 }
  0x81   :  { %1059 = vmatprep.subr.bf16.mxu1 %v1058_v39  ;;  %1155 = vmatprep.subr.bf16.mxu0 %v1649_v36 }
  0x84   :  { %1061 = vmatpush1.bf16.msra.mxu1 %v1060_v26  ;;  %1157 = vmatpush1.bf16.msra.mxu0 %v1650_v37 }
  0x85   :  { %1063 = vmatprep.subr.bf16.mxu1 %v1062_v21  ;;  %1159 = vmatprep.subr.bf16.mxu0 %v1651_v2 }
  0x88   :  { %1065 = vmatpush1.bf16.msra.mxu1 %v1064_v46  ;;  %1161 = vmatpush1.bf16.msra.mxu0 %v1652_v54 }
  0x8b   :  { %557 = vmatmul.mubr.f32.vlgmr.msra.gmra.mrb[0].mxu1 %v1653_v62  ;;  %935 = vmatmul.mubr.f32.vlgmr.msra.gmra.mrb[0].mxu0 %v1407_v61 }
 0x15e   :  { %v558_v31 = vpop.f32.mrb[0].mxu1  ;;  %v936_v47 = vpop.f32.mrb[0].mxu0 }
 0x15f   :  { %v1162_v56 = vadd.f32 %v558_v31, %v79_v22  ;;  %v560_v51 = vpop.f32.mrb[1].mxu1  ;;  %v938_v59 = vpop.f32.mrb[1].mxu0 }
 0x160   :  { %v1164_v32 = vadd.f32 %v560_v51, %v83_v11 }
 0x161   :  { %v1163_v35 = vadd.f32 %v1162_v56, %v936_v47 }
 0x162   :  { %v1165_v61 = vadd.f32 %v1164_v32, %v938_v59 }
 0x164   :  { %v943_v53 = vcombine.low %v1163_v35, %v1165_v61 }
 0x166   :  { %969 = vst.sshfl [vmem:[#allocation7] sm:$0x33 pattern:$0x76325410] %v943_v53 }
 0x167   :  { %1235 = shalt.err (!%p1232_p6)
}
 0x168   :  { %s1236_s15 = scalar_lea.hbm %s1584_s3, 64 }
 0x169   :  { %p1237_p7 = scmp.ne.s32.totalorder %s1584_s3, %s1236_s15  ;;  %p1240_p8 = scmp.lt.u32.totalorder %s1236_s15, %s1584_s3 }
 0x16b   :  { %p1242_p9 = pnand %p1240_p8, %p1237_p7 }
 0x16d   :  { %1245 = shalt.err (!%p1242_p9)
}
 0x16e   :  { %962 = dma.vmem_to_hbm [thread:$0]  %s960_s12, 64, %s1584_s3, [#allocation4]  }
 0x16f   :  { %1250 = dma.done.wait [#allocation4], 64  }
 0x170   :  { %1251 = vsyncadd [#allocation4], 4294967232 }
 0x171   :  { %966 = vsyncpa [#allocation3], 1 }
 0x172   :  { %967 = vsyncpa [#allocation6], 1 }
 0x173   :  { %968 = vsyncpa [#allocation4], 1 }

</bundles_post_ra>
